<compile_context>
chip_gen: v7x
topology: tpu7x:2x2x1
jax: 0.10.0
libtpu: 0.0.40
codegen_flags: <defaults>
</compile_context>

<pallas_src>
import functools

import jax
import jax.numpy as jnp
from jax import lax
from jax.experimental import pallas as pl
from jax.experimental.pallas import tpu as pltpu

_PAD_VALUE = -100.0


def _round_up(x: int, m: int) -> int:
    return ((x + m - 1) // m) * m


def _round_down(x: int, m: int) -> int:
    return (x // m) * m


def _suffix_mae_kernel(x_ref, t_ref, o_ref, num_ref, den_ref, *, w, tw, need_col_mask):
    # x_ref, t_ref : (TB, TW) f32 blocks (batch on sublanes, window on lanes)
    # o_ref        : (TB, 1)  f32 block  (per-instance result, written once)
    # num_ref/den_ref : (TB, 1) f32 VMEM accumulators, resident across the
    #                   window (reduction) grid axis.
    k = pl.program_id(1)

    @pl.when(k == 0)
    def _init():
        num_ref[...] = jnp.zeros_like(num_ref)
        den_ref[...] = jnp.zeros_like(den_ref)

    x = x_ref[...]
    t = t_ref[...]

    valid = t != _PAD_VALUE
    if need_col_mask:
        # Last window block extends past W: mask out-of-bounds (garbage) cols.
        col = lax.broadcasted_iota(jnp.int32, x.shape, 1) + k * tw
        valid = jnp.logical_and(valid, col < w)

    # Fold the mask into a select (avoids a separate multiply), then do the
    # per-row (cross-lane) reduction on the XLU.
    err = jnp.where(valid, jnp.abs(x - t), 0.0)
    num_ref[...] += jnp.sum(err, axis=1, keepdims=True)
    den_ref[...] += jnp.sum(valid.astype(jnp.float32), axis=1, keepdims=True)

    @pl.when(k == pl.num_programs(1) - 1)
    def _finalize():
        # Exact divide; rows that are entirely padding give 0/0 -> NaN, which
        # matches the PyTorch reference semantics.
        o_ref[...] = num_ref[...] / den_ref[...]


@functools.partial(jax.jit, static_argnames=("lane_tile", "sublane_tile"))
def suffix_length_normalized_mae(inputs, targets, *, lane_tile=512, sublane_tile=1024):
    """inputs, targets: (batch, window, 1) float32 -> (batch,) float32."""
    assert inputs.shape == targets.shape
    assert inputs.ndim == 3 and inputs.shape[-1] == 1
    b, w, _ = inputs.shape

    # Contiguous squeeze -> free reshape, no transpose, no full-array pad.
    x = jnp.reshape(inputs, (b, w))
    t = jnp.reshape(targets, (b, w))

    lane_tile = _round_up(max(int(lane_tile), 128), 128)
    sublane_tile = _round_up(max(int(sublane_tile), 8), 8)

    # Window (lane) tile: take the full window if it fits in one block
    # (block dim == full array dim is always legal), otherwise a 128-multiple
    # tile with in-kernel masking of the ragged last block.
    tw = w if w <= lane_tile else lane_tile
    need_col_mask = (w % tw) != 0

    # Batch (sublane) tile: multiple of 8 and never larger than the batch dim.
    # Only the degenerate b < 8 case pads (a handful of rows).
    if b < 8:
        pad_rows = 8 - b
        x = jnp.pad(x, ((0, pad_rows), (0, 0)))
        t = jnp.pad(t, ((0, pad_rows), (0, 0)), constant_values=_PAD_VALUE)
        b_rows = 8
    else:
        b_rows = b
    tb = min(sublane_tile, _round_down(b_rows, 8))

    nb = pl.cdiv(b_rows, tb)   # ragged last batch block: garbage rows sliced off
    nk = pl.cdiv(w, tw)

    kernel = functools.partial(
        _suffix_mae_kernel, w=w, tw=tw, need_col_mask=need_col_mask
    )

    out = pl.pallas_call(
        kernel,
        out_shape=jax.ShapeDtypeStruct((nb * tb, 1), jnp.float32),
        grid_spec=pltpu.PrefetchScalarGridSpec(
            num_scalar_prefetch=0,
            grid=(nb, nk),
            in_specs=[
                pl.BlockSpec((tb, tw), lambda i, k: (i, k)),
                pl.BlockSpec((tb, tw), lambda i, k: (i, k)),
            ],
            out_specs=pl.BlockSpec((tb, 1), lambda i, k: (i, 0)),
            scratch_shapes=[
                pltpu.VMEM((tb, 1), jnp.float32),
                pltpu.VMEM((tb, 1), jnp.float32),
            ],
        ),
        compiler_params=pltpu.CompilerParams(
            dimension_semantics=("parallel", "arbitrary"),
            vmem_limit_bytes=32 * 1024 * 1024,
        ),
        cost_estimate=pl.CostEstimate(
            flops=6 * b * w,
            transcendentals=0,
            bytes_accessed=8 * b * w + 4 * b,
        ),
    )(x, t)

    return out[:b, 0]  # (B,)


def _reference(inputs, targets):
    x = inputs[:, :, 0]
    t = targets[:, :, 0]
    mask = (t != _PAD_VALUE).astype(jnp.float32)
    ae = jnp.abs(x - t) * mask
    return jnp.sum(ae, axis=-1) / jnp.sum(mask, axis=-1)


def _apply_padding(targets, lengths):
    # Positions >= lengths[b] become padded event tokens (-100.0).
    pos = jnp.arange(targets.shape[1])[None, :, None]
    return jnp.where(pos >= lengths[:, None, None], jnp.float32(_PAD_VALUE), targets)


if __name__ == "__main__":
    key = jax.random.PRNGKey(0)

    # --- Case 1: the module's nominal small shape (batch=2, window=8). -----
    k1, k2 = jax.random.split(key)
    batch, window = 2, 8
    inputs = jax.random.normal(k1, (batch, window, 1), dtype=jnp.float32)
    targets = jax.random.normal(k2, (batch, window, 1), dtype=jnp.float32)
    # Pad last 3 positions of instance 0 and last 5 of instance 1.
    targets = _apply_padding(targets, jnp.array([5, 3], dtype=jnp.int32))

    out = suffix_length_normalized_mae(inputs, targets)
    out = jax.block_until_ready(out)
    ref = _reference(inputs, targets)
    assert out.shape == (batch,)
    assert out.dtype == jnp.float32
    assert jnp.allclose(out, ref, rtol=1e-5, atol=1e-5)

    # --- Case 2: odd sizes + small tiles to exercise the ragged batch tile,
    # the tiled (masked) window reduction axis, and the parallel batch axis.
    k3, k4, k5 = jax.random.split(jax.random.PRNGKey(1), 3)
    batch2, window2 = 200, 300
    inputs2 = jax.random.normal(k3, (batch2, window2, 1), dtype=jnp.float32)
    targets2 = jax.random.normal(k4, (batch2, window2, 1), dtype=jnp.float32)
    lengths2 = 1 + (jax.random.randint(k5, (batch2,), 0, window2)).astype(jnp.int32)
    targets2 = _apply_padding(targets2, lengths2)

    out2 = suffix_length_normalized_mae(
        inputs2, targets2, lane_tile=128, sublane_tile=64
    )
    out2 = jax.block_until_ready(out2)
    ref2 = _reference(inputs2, targets2)
    assert out2.shape == (batch2,)
    assert jnp.allclose(out2, ref2, rtol=1e-5, atol=1e-5)

    print("KERNEL_OK")
</pallas_src>

<mosaic_0001>
module attributes {stable_mosaic.version = 11 : i64} {
  func.func @_suffix_mae_kernel(%arg0: i32, %arg1: i32, %arg2: memref<8x8xf32, #tpu.memory_space<vmem>>, %arg3: memref<8x8xf32, #tpu.memory_space<vmem>>, %arg4: memref<8x1xf32, #tpu.memory_space<vmem>>, %arg5: memref<8x1xf32, #tpu.memory_space<vmem>>, %arg6: memref<8x1xf32, #tpu.memory_space<vmem>>) attributes {dimension_semantics = [#tpu.dimension_semantics<parallel>, #tpu.dimension_semantics<arbitrary>], iteration_bounds = array<i64: 1, 1>, scalar_prefetch = 0 : i64, scratch_operands = 2 : i64, tpu.core_type = #tpu.core_type<tc>, window_params = [{transform_indices = @transform_0, window_bounds = array<i64: 8, 8>}, {transform_indices = @transform_1, window_bounds = array<i64: 8, 8>}, {transform_indices = @transform_2, window_bounds = array<i64: 8, 1>}]} {
    %c0_i32 = arith.constant 0 : i32
    %0 = arith.cmpi eq, %arg1, %c0_i32 : i32
    %1 = arith.extui %0 : i1 to i32
    %c0_i32_0 = arith.constant 0 : i32
    %2 = arith.cmpi ne, %1, %c0_i32_0 : i32
    scf.if %2 {
      %cst_17 = arith.constant 0.000000e+00 : f32
      %26 = vector.broadcast %cst_17 : f32 to vector<8x1xf32>
      %c0_18 = arith.constant 0 : index
      %c0_19 = arith.constant 0 : index
      %27 = vector.load %arg5[%c0_18, %c0_19] : memref<8x1xf32, #tpu.memory_space<vmem>>, vector<8x1xf32>
      tpu.vector_store %arg5[%c0_18, %c0_19], %26 {strides = array<i32>} : memref<8x1xf32, #tpu.memory_space<vmem>>, vector<8x1xf32>,
      %cst_20 = arith.constant 0.000000e+00 : f32
      %28 = vector.broadcast %cst_20 : f32 to vector<8x1xf32>
      %c0_21 = arith.constant 0 : index
      %c0_22 = arith.constant 0 : index
      %29 = vector.load %arg6[%c0_21, %c0_22] : memref<8x1xf32, #tpu.memory_space<vmem>>, vector<8x1xf32>
      tpu.vector_store %arg6[%c0_21, %c0_22], %28 {strides = array<i32>} : memref<8x1xf32, #tpu.memory_space<vmem>>, vector<8x1xf32>,
    } else {
    }
    %c0 = arith.constant 0 : index
    %c0_1 = arith.constant 0 : index
    %3 = vector.load %arg2[%c0, %c0_1] : memref<8x8xf32, #tpu.memory_space<vmem>>, vector<8x8xf32>
    %c0_2 = arith.constant 0 : index
    %c0_3 = arith.constant 0 : index
    %4 = vector.load %arg3[%c0_2, %c0_3] : memref<8x8xf32, #tpu.memory_space<vmem>>, vector<8x8xf32>
    %cst = arith.constant -1.000000e+02 : f32
    %5 = vector.broadcast %cst : f32 to vector<8x8xf32>
    %6 = arith.cmpf one, %4, %5 : vector<8x8xf32>
    %7 = arith.subf %3, %4 : vector<8x8xf32>
    %8 = math.absf %7 : vector<8x8xf32>
    %cst_4 = arith.constant 0.000000e+00 : f32
    %9 = vector.broadcast %cst_4 : f32 to vector<8x8xf32>
    %10 = arith.select %6, %8, %9 : vector<8x8xi1>, vector<8x8xf32>
    %c0_5 = arith.constant 0 : index
    %c0_6 = arith.constant 0 : index
    %11 = vector.load %arg5[%c0_5, %c0_6] : memref<8x1xf32, #tpu.memory_space<vmem>>, vector<8x1xf32>
    %cst_7 = arith.constant dense<0.000000e+00> : vector<8xf32>
    %12 = vector.multi_reduction <add>, %10, %cst_7 [1] : vector<8x8xf32> to vector<8xf32>
    %13 = vector.shape_cast %12 : vector<8xf32> to vector<8x1xf32>
    %14 = arith.addf %11, %13 : vector<8x1xf32>
    %c0_8 = arith.constant 0 : index
    %c0_9 = arith.constant 0 : index
    %15 = vector.load %arg5[%c0_8, %c0_9] : memref<8x1xf32, #tpu.memory_space<vmem>>, vector<8x1xf32>
    tpu.vector_store %arg5[%c0_8, %c0_9], %14 {strides = array<i32>} : memref<8x1xf32, #tpu.memory_space<vmem>>, vector<8x1xf32>,
    %c0_10 = arith.constant 0 : index
    %c0_11 = arith.constant 0 : index
    %16 = vector.load %arg6[%c0_10, %c0_11] : memref<8x1xf32, #tpu.memory_space<vmem>>, vector<8x1xf32>
    %17 = arith.extui %6 : vector<8x8xi1> to vector<8x8xi32>
    %18 = arith.sitofp %17 : vector<8x8xi32> to vector<8x8xf32>
    %cst_12 = arith.constant dense<0.000000e+00> : vector<8xf32>
    %19 = vector.multi_reduction <add>, %18, %cst_12 [1] : vector<8x8xf32> to vector<8xf32>
    %20 = vector.shape_cast %19 : vector<8xf32> to vector<8x1xf32>
    %21 = arith.addf %16, %20 : vector<8x1xf32>
    %c0_13 = arith.constant 0 : index
    %c0_14 = arith.constant 0 : index
    %22 = vector.load %arg6[%c0_13, %c0_14] : memref<8x1xf32, #tpu.memory_space<vmem>>, vector<8x1xf32>
    tpu.vector_store %arg6[%c0_13, %c0_14], %21 {strides = array<i32>} : memref<8x1xf32, #tpu.memory_space<vmem>>, vector<8x1xf32>,
    %c0_i32_15 = arith.constant 0 : i32
    %23 = arith.cmpi eq, %arg1, %c0_i32_15 : i32
    %24 = arith.extui %23 : i1 to i32
    %c0_i32_16 = arith.constant 0 : i32
    %25 = arith.cmpi ne, %24, %c0_i32_16 : i32
    scf.if %25 {
      %c0_17 = arith.constant 0 : index
      %c0_18 = arith.constant 0 : index
      %26 = vector.load %arg5[%c0_17, %c0_18] : memref<8x1xf32, #tpu.memory_space<vmem>>, vector<8x1xf32>
      %c0_19 = arith.constant 0 : index
      %c0_20 = arith.constant 0 : index
      %27 = vector.load %arg6[%c0_19, %c0_20] : memref<8x1xf32, #tpu.memory_space<vmem>>, vector<8x1xf32>
      %28 = arith.divf %26, %27 : vector<8x1xf32>
      %c0_21 = arith.constant 0 : index
      %c0_22 = arith.constant 0 : index
      %29 = vector.load %arg4[%c0_21, %c0_22] : memref<8x1xf32, #tpu.memory_space<vmem>>, vector<8x1xf32>
      tpu.vector_store %arg4[%c0_21, %c0_22], %28 {strides = array<i32>} : memref<8x1xf32, #tpu.memory_space<vmem>>, vector<8x1xf32>,
    } else {
    }
    return
  }
  func.func @transform_0(%arg0: i32, %arg1: i32) -> (i32, i32) {
    %c0_i32 = arith.constant 0 : i32
    return %arg0, %arg1 : i32, i32
  }
  func.func @transform_1(%arg0: i32, %arg1: i32) -> (i32, i32) {
    %c0_i32 = arith.constant 0 : i32
    return %arg0, %arg1 : i32, i32
  }
  func.func @transform_2(%arg0: i32, %arg1: i32) -> (i32, i32) {
    %c0_i32 = arith.constant 0 : i32
    %c0_i32_0 = arith.constant 0 : i32
    return %arg0, %c0_i32 : i32, i32
  }
}

</mosaic_0001>

<bundles_post_ra>
// kernel: suffix_length_normalized_mae.1
= control target key start
LH: loop header
LB: loop body
LE: loop exit
PB: predicated region body
PF: predicated region fallthrough
CT: control target
= control target key end

     0   :  { %vm15_vm0 = vcmask 7168   ;;  %v56_v0 = vmov 0.0   ;;  %vm25_vm1 = vcmask 64512   ;;  %s86_s1 = inlined_call_operand.vmem [shape: f32[8,8], index: 1, kind: input, shape index: {}]   ;;  %s87_s0 = inlined_call_operand.vmem [shape: f32[8,8], index: 0, kind: input, shape index: {}]   ;;  %s88_s2 = inlined_call_operand.vmem [shape: f32[8,1], index: 2, kind: output, shape index: {}]  }
   0x1   :  { %16 = vst.msk [vmem:[#allocation2] sm:$0xff] %vm15_vm0, %v56_v0  ;;  %17 = vst.msk [vmem:[#allocation3] sm:$0xff] %vm15_vm0, %v56_v0  ;;  %v19_v1 = vld [vmem:[%s86_s1] sm:$0xff] }
   0x2   :  { %v18_v2 = vld [vmem:[%s87_s0] sm:$0xff]  ;;  %vm20_vm2 = vcmp.ne.f32.partialorder %v19_v1, -100.0 }
   0x3   :  { %v21_v3 = vsub.f32 %v18_v2, %v19_v1  ;;  %v52_v4 = vsel %vm20_vm2, 1.0, %v56_v0 }
   0x4   :  { %v35_v5 = vsel %vm25_vm1, %v52_v4, 0.0 }
   0x5   :  { %v22_v6 = vand.u32 2147483647, %v21_v3  ;;  %36 = vadd.xlane.f32.xlu0 %v35_v5 }
   0x7   :  { %v23_v7 = vsel %vm20_vm2, %v22_v6, 0.0 }
   0x8   :  { %v26_v8 = vsel %vm25_vm1, %v23_v7, 0.0  ;;  %v32_v9 = vld [vmem:[#allocation3] sm:$0xff]  ;;  %v24_v12 = vld [vmem:[#allocation2] sm:$0xff] }
   0x9   :  { %27 = vadd.xlane.f32.xlu0 %v26_v8 }
  0x92   :  { %v37_v10 = vpop.xlane.xlu0 %36 }
  0x93   :  { %v38_v11 = vadd.f32 %v37_v10, %v32_v9 }
  0x95   :  { %39 = vst.msk [vmem:[#allocation3] sm:$0xff] %vm15_vm0, %v38_v11 }
  0x96   :  { %v28_v13 = vpop.xlane.xlu0 %27 }
  0x97   :  { %v29_v14 = vadd.f32 %v28_v13, %v24_v12 }
  0x99   :  { %31 = vst.msk [vmem:[#allocation2] sm:$0xff] %vm15_vm0, %v29_v14 }
  0x9c   :  { %v44_v15 = vld [vmem:[#allocation3] sm:$0xff] }
  0x9d   :  { %54 = vrcp.f32 %v44_v15 }
  0xa0   :  { %v43_v16 = vld [vmem:[#allocation2] sm:$0xff] }
  0xa7   :  { %v55_v17 = vpop.eup %54 }
  0xa8   :  { %v46_v18 = vmul.f32 %v55_v17, %v43_v16 }
  0xaa   :  { %47 = vst.msk [vmem:[%s88_s2] sm:$0xff] %vm15_vm0, %v46_v18 }

</bundles_post_ra>
